<compile_context>
chip_gen: v7x
topology: tpu7x:2x2x1
jax: 0.10.0
libtpu: 0.0.40
codegen_flags: <defaults>
</compile_context>

<pallas_src>
import functools

import jax
import jax.numpy as jnp
from jax.experimental import pallas as pl
from jax.experimental.pallas import tpu as pltpu

LANE = 128      # lane width (last-dim alignment)
SUBLANE = 8     # sublane width (second-to-last dim alignment, f32)


def _round_up(x, m):
    return (x + m - 1) // m * m


def mlp_kernel(x_ref, w1_ref, b1_ref, w2_ref, b2_ref, w3_ref, b3_ref, o_ref):
    """fc1 -> ReLU -> fc2 -> ReLU -> fc3 on one (tb, features) batch tile.

    Dots run on the MXU with f32 accumulation; bias-add / ReLU stay in f32 on
    the VPU.  Weights/biases use constant index maps so they stay resident in
    VMEM across the whole batch grid.
    """
    dot_dtype = w1_ref.dtype
    h1 = jnp.dot(x_ref[...], w1_ref[...], preferred_element_type=jnp.float32)
    h1 = jnp.maximum(h1 + b1_ref[...], 0.0)
    h2 = jnp.dot(h1.astype(dot_dtype), w2_ref[...],
                 preferred_element_type=jnp.float32)
    h2 = jnp.maximum(h2 + b2_ref[...], 0.0)
    out = jnp.dot(h2.astype(dot_dtype), w3_ref[...],
                  preferred_element_type=jnp.float32) + b3_ref[...]
    o_ref[...] = out.astype(o_ref.dtype)
    # TODO(synk): for very large tb / hidden, sub-tile the batch inside the
    # kernel with lax.fori_loop(unroll=True) to overlap MXU and VPU phases.


def _choose_batch_tile(batch, vmem_row_cap):
    """Batch tile: >=2 grid steps when the batch permits, minimal pad waste."""
    if batch <= SUBLANE:
        return batch                                  # single full-batch block
    cap = max(SUBLANE, min(vmem_row_cap, 1024))       # 512-1024 rows ~ roofline sweet spot
    min_steps = 4 if batch >= 512 else 2              # megacore needs >=2; >=4 pipelines better
    max_steps = batch // SUBLANE                      # every step keeps >=8 rows
    n_steps = min(max(pl.cdiv(batch, cap), min_steps), max_steps)
    if n_steps <= 1:
        return batch                                  # full-batch block, no padding
    return _round_up(pl.cdiv(batch, n_steps), SUBLANE)


def _build_call(xp, w1, b1, w2, b2, w3, b3, *, tb, out_dtype,
                vmem_limit_bytes, cost, single_buffer_consts):
    bp, in_size = xp.shape
    hid = w1.shape[1]
    out_size = w3.shape[1]
    grid = (bp // tb,)

    const_kwargs = {}
    if single_buffer_consts:
        # Constant-index blocks never change; one buffer halves their VMEM cost
        # (matters for large hidden sizes on v7x's 64 MiB per-TC VMEM).
        const_kwargs = dict(pipeline_mode=pl.Buffered(1))

    def const_spec(shape):
        return pl.BlockSpec(shape, lambda i: (0, 0), **const_kwargs)

    return pl.pallas_call(
        mlp_kernel,
        out_shape=jax.ShapeDtypeStruct((bp, out_size), out_dtype),
        grid=grid,
        in_specs=[
            pl.BlockSpec((tb, in_size), lambda i: (i, 0)),    # x: batch-tiled
            const_spec((in_size, hid)), const_spec((1, hid)),  # fc1
            const_spec((hid, hid)), const_spec((1, hid)),      # fc2
            const_spec((hid, out_size)), const_spec((1, out_size)),  # fc3
        ],
        out_specs=pl.BlockSpec((tb, out_size), lambda i: (i, 0)),
        compiler_params=pltpu.CompilerParams(
            dimension_semantics=("parallel",),   # shard batch steps across TCs (v7x)
            vmem_limit_bytes=vmem_limit_bytes,
        ),
        cost_estimate=cost,
    )(xp, w1, b1, w2, b2, w3, b3)


def mlp_forward(x, params, *, compute_dtype=jnp.bfloat16,
                vmem_budget_bytes=48 << 20):
    """Forward pass of MLPModel. x: (batch, in); weights stored (in, out)."""
    w1, b1, w2, b2, w3, b3 = params
    batch, in_size = x.shape
    hid = w1.shape[1]
    out_size = w3.shape[1]
    out_dtype = x.dtype

    cb = jnp.dtype(compute_dtype).itemsize
    ob = jnp.dtype(out_dtype).itemsize

    # ---- VMEM-budget-driven batch tile --------------------------------------
    n_w = in_size * hid + hid * hid + hid * out_size
    n_b = 2 * hid + out_size
    resident_bytes = 2 * (n_w * cb + n_b * 4)          # worst case: double-buffered weights
    per_row_bytes = (2 * in_size * cb                   # double-buffered x tile
                     + 2 * out_size * ob                # double-buffered out tile
                     + 2 * hid * (4 + cb))              # h1/h2 f32 + bf16 copies
    headroom = 4 << 20
    row_cap = (vmem_budget_bytes - resident_bytes - headroom) // max(per_row_bytes, 1)
    if row_cap < SUBLANE:
        # TODO(synk): tile the hidden/contraction dims for layers whose weights
        # alone exceed the VMEM budget; not needed for this module's sizes.
        row_cap = SUBLANE

    tb = _choose_batch_tile(batch, int(row_cap))
    bp = _round_up(batch, tb)

    # ---- cast (bf16 MXU operands) and batch-only zero padding ---------------
    xp = x.astype(compute_dtype)
    if bp != batch:
        xp = jnp.pad(xp, ((0, bp - batch), (0, 0)))     # zero rows, sliced off below
    w1c, w2c, w3c = (w.astype(compute_dtype) for w in (w1, w2, w3))
    b1c, b2c, b3c = (b.astype(jnp.float32) for b in (b1, b2, b3))

    # Advisory cost estimate using the actual bytes moved (padded batch, bf16).
    flops = 2 * bp * n_w
    bytes_accessed = bp * in_size * cb + n_w * cb + n_b * 4 + bp * out_size * ob
    cost = pl.CostEstimate(flops=flops, transcendentals=0,
                           bytes_accessed=bytes_accessed)

    vmem_est = resident_bytes + tb * per_row_bytes
    vmem_limit = int(min(max(2 * vmem_est, 16 << 20), vmem_budget_bytes))

    call = functools.partial(
        _build_call, xp, w1c, b1c, w2c, b2c, w3c, b3c,
        tb=tb, out_dtype=out_dtype, vmem_limit_bytes=vmem_limit, cost=cost)
    try:
        out_p = call(single_buffer_consts=True)
    except Exception:
        # Fallback if this JAX build rejects pipeline_mode=pl.Buffered(1):
        # default double-buffered constant blocks are correct, just use more VMEM.
        out_p = call(single_buffer_consts=False)

    return out_p if bp == batch else out_p[:batch]


def init_linear(key, in_features, out_features):
    # Matches torch.nn.Linear default init: U(-1/sqrt(fan_in), 1/sqrt(fan_in)).
    kw, kb = jax.random.split(key)
    bound = 1.0 / jnp.sqrt(jnp.float32(in_features))
    # Stored as (in, out): transpose of PyTorch's (out, in) weight layout.
    w = jax.random.uniform(kw, (in_features, out_features), jnp.float32, -bound, bound)
    b = jax.random.uniform(kb, (1, out_features), jnp.float32, -bound, bound)
    return w, b


def reference_mlp(x, params, compute_dtype=jnp.bfloat16):
    # Same numerics as the kernel: bf16 dot operands, f32 accumulation/elementwise.
    w1, b1, w2, b2, w3, b3 = params
    cd = compute_dtype

    def lin(a, w, b):
        return jnp.dot(a.astype(cd), w.astype(cd),
                       preferred_element_type=jnp.float32) + b

    h1 = jnp.maximum(lin(x, w1, b1), 0.0)
    h2 = jnp.maximum(lin(h1, w2, b2), 0.0)
    return lin(h2, w3, b3)


if __name__ == "__main__":
    # MLPModel(input_size=16, hidden_size=32, output_size=8).
    input_size, hidden_size, output_size = 16, 32, 8

    key = jax.random.PRNGKey(0)
    kx, k1, k2, k3, kx2 = jax.random.split(key, 5)

    w1, b1 = init_linear(k1, input_size, hidden_size)
    w2, b2 = init_linear(k2, hidden_size, hidden_size)
    w3, b3 = init_linear(k3, hidden_size, output_size)
    params = (w1, b1, w2, b2, w3, b3)

    # Case 1: batch=8 -> single full-batch block, no padding anywhere.
    x = jax.random.normal(kx, (8, input_size), jnp.float32)
    out = jax.block_until_ready(mlp_forward(x, params))
    ref = reference_mlp(x, params)
    assert out.shape == (8, output_size)
    assert jnp.allclose(out, ref, atol=1e-2, rtol=1e-2), "case 1 mismatch vs reference"

    # Case 2: batch=20 -> 2-step grid (megacore-shardable), minimal batch pad.
    x2 = jax.random.normal(kx2, (20, input_size), jnp.float32)
    out2 = jax.block_until_ready(mlp_forward(x2, params))
    ref2 = reference_mlp(x2, params)
    assert out2.shape == (20, output_size)
    assert jnp.allclose(out2, ref2, atol=1e-2, rtol=1e-2), "case 2 mismatch vs reference"

    print("KERNEL_OK")
</pallas_src>

<mosaic_0001>
module attributes {stable_mosaic.version = 11 : i64} {
  func.func @mlp_kernel(%arg0: i32, %arg1: memref<8x16xbf16, #tpu.memory_space<vmem>>, %arg2: memref<16x32xbf16, #tpu.memory_space<vmem>>, %arg3: memref<1x32xf32, #tpu.memory_space<vmem>>, %arg4: memref<32x32xbf16, #tpu.memory_space<vmem>>, %arg5: memref<1x32xf32, #tpu.memory_space<vmem>>, %arg6: memref<32x8xbf16, #tpu.memory_space<vmem>>, %arg7: memref<1x8xf32, #tpu.memory_space<vmem>>, %arg8: memref<8x8xf32, #tpu.memory_space<vmem>>) attributes {dimension_semantics = [#tpu.dimension_semantics<parallel>], iteration_bounds = array<i64: 1>, scalar_prefetch = 0 : i64, scratch_operands = 0 : i64, tpu.core_type = #tpu.core_type<tc>, window_params = [{transform_indices = @transform_0, window_bounds = array<i64: 8, 16>}, {pipeline_mode = #tpu.pipeline_mode<synchronous>, transform_indices = @transform_1, window_bounds = array<i64: 16, 32>}, {pipeline_mode = #tpu.pipeline_mode<synchronous>, transform_indices = @transform_2, window_bounds = array<i64: 1, 32>}, {pipeline_mode = #tpu.pipeline_mode<synchronous>, transform_indices = @transform_3, window_bounds = array<i64: 32, 32>}, {pipeline_mode = #tpu.pipeline_mode<synchronous>, transform_indices = @transform_4, window_bounds = array<i64: 1, 32>}, {pipeline_mode = #tpu.pipeline_mode<synchronous>, transform_indices = @transform_5, window_bounds = array<i64: 32, 8>}, {pipeline_mode = #tpu.pipeline_mode<synchronous>, transform_indices = @transform_6, window_bounds = array<i64: 1, 8>}, {transform_indices = @transform_7, window_bounds = array<i64: 8, 8>}]} {
    %c0 = arith.constant 0 : index
    %c0_0 = arith.constant 0 : index
    %0 = vector.load %arg1[%c0, %c0_0] : memref<8x16xbf16, #tpu.memory_space<vmem>>, vector<8x16xbf16>
    %c0_1 = arith.constant 0 : index
    %c0_2 = arith.constant 0 : index
    %1 = vector.load %arg2[%c0_1, %c0_2] : memref<16x32xbf16, #tpu.memory_space<vmem>>, vector<16x32xbf16>
    %cst = arith.constant dense<0.000000e+00> : vector<8x32xf32>
    %2 = tpu.matmul %0, %1, %cst {dimension_numbers = #tpu.dot_dimension_numbers<[1], [0], [0], [1], [0, 0, 1, 1], [], []>} : vector<8x16xbf16>, vector<16x32xbf16>, vector<8x32xf32> -> vector<8x32xf32>
    %c0_3 = arith.constant 0 : index
    %c0_4 = arith.constant 0 : index
    %3 = vector.load %arg3[%c0_3, %c0_4] : memref<1x32xf32, #tpu.memory_space<vmem>>, vector<1x32xf32>
    %4 = vector.broadcast %3 : vector<1x32xf32> to vector<8x32xf32>
    %5 = arith.addf %2, %4 : vector<8x32xf32>
    %cst_5 = arith.constant 0.000000e+00 : f32
    %6 = vector.broadcast %cst_5 : f32 to vector<8x32xf32>
    %7 = arith.maximumf %5, %6 : vector<8x32xf32>
    %8 = arith.truncf %7 : vector<8x32xf32> to vector<8x32xbf16>
    %c0_6 = arith.constant 0 : index
    %c0_7 = arith.constant 0 : index
    %9 = vector.load %arg4[%c0_6, %c0_7] : memref<32x32xbf16, #tpu.memory_space<vmem>>, vector<32x32xbf16>
    %cst_8 = arith.constant dense<0.000000e+00> : vector<8x32xf32>
    %10 = tpu.matmul %8, %9, %cst_8 {dimension_numbers = #tpu.dot_dimension_numbers<[1], [0], [0], [1], [0, 0, 1, 1], [], []>} : vector<8x32xbf16>, vector<32x32xbf16>, vector<8x32xf32> -> vector<8x32xf32>
    %c0_9 = arith.constant 0 : index
    %c0_10 = arith.constant 0 : index
    %11 = vector.load %arg5[%c0_9, %c0_10] : memref<1x32xf32, #tpu.memory_space<vmem>>, vector<1x32xf32>
    %12 = vector.broadcast %11 : vector<1x32xf32> to vector<8x32xf32>
    %13 = arith.addf %10, %12 : vector<8x32xf32>
    %cst_11 = arith.constant 0.000000e+00 : f32
    %14 = vector.broadcast %cst_11 : f32 to vector<8x32xf32>
    %15 = arith.maximumf %13, %14 : vector<8x32xf32>
    %16 = arith.truncf %15 : vector<8x32xf32> to vector<8x32xbf16>
    %c0_12 = arith.constant 0 : index
    %c0_13 = arith.constant 0 : index
    %17 = vector.load %arg6[%c0_12, %c0_13] : memref<32x8xbf16, #tpu.memory_space<vmem>>, vector<32x8xbf16>
    %cst_14 = arith.constant dense<0.000000e+00> : vector<8x8xf32>
    %18 = tpu.matmul %16, %17, %cst_14 {dimension_numbers = #tpu.dot_dimension_numbers<[1], [0], [0], [1], [0, 0, 1, 1], [], []>} : vector<8x32xbf16>, vector<32x8xbf16>, vector<8x8xf32> -> vector<8x8xf32>
    %c0_15 = arith.constant 0 : index
    %c0_16 = arith.constant 0 : index
    %19 = vector.load %arg7[%c0_15, %c0_16] : memref<1x8xf32, #tpu.memory_space<vmem>>, vector<1x8xf32>
    %20 = vector.broadcast %19 : vector<1x8xf32> to vector<8x8xf32>
    %21 = arith.addf %18, %20 : vector<8x8xf32>
    %c0_17 = arith.constant 0 : index
    %c0_18 = arith.constant 0 : index
    %22 = vector.load %arg8[%c0_17, %c0_18] : memref<8x8xf32, #tpu.memory_space<vmem>>, vector<8x8xf32>
    tpu.vector_store %arg8[%c0_17, %c0_18], %21 {strides = array<i32>} : memref<8x8xf32, #tpu.memory_space<vmem>>, vector<8x8xf32>,
    return
  }
  func.func @transform_0(%arg0: i32) -> (i32, i32) {
    %c0_i32 = arith.constant 0 : i32
    %c0_i32_0 = arith.constant 0 : i32
    return %arg0, %c0_i32 : i32, i32
  }
  func.func @transform_1(%arg0: i32) -> (i32, i32) {
    %c0_i32 = arith.constant 0 : i32
    %c0_i32_0 = arith.constant 0 : i32
    %c0_i32_1 = arith.constant 0 : i32
    return %c0_i32, %c0_i32_0 : i32, i32
  }
  func.func @transform_2(%arg0: i32) -> (i32, i32) {
    %c0_i32 = arith.constant 0 : i32
    %c0_i32_0 = arith.constant 0 : i32
    %c0_i32_1 = arith.constant 0 : i32
    return %c0_i32, %c0_i32_0 : i32, i32
  }
  func.func @transform_3(%arg0: i32) -> (i32, i32) {
    %c0_i32 = arith.constant 0 : i32
    %c0_i32_0 = arith.constant 0 : i32
    %c0_i32_1 = arith.constant 0 : i32
    return %c0_i32, %c0_i32_0 : i32, i32
  }
  func.func @transform_4(%arg0: i32) -> (i32, i32) {
    %c0_i32 = arith.constant 0 : i32
    %c0_i32_0 = arith.constant 0 : i32
    %c0_i32_1 = arith.constant 0 : i32
    return %c0_i32, %c0_i32_0 : i32, i32
  }
  func.func @transform_5(%arg0: i32) -> (i32, i32) {
    %c0_i32 = arith.constant 0 : i32
    %c0_i32_0 = arith.constant 0 : i32
    %c0_i32_1 = arith.constant 0 : i32
    return %c0_i32, %c0_i32_0 : i32, i32
  }
  func.func @transform_6(%arg0: i32) -> (i32, i32) {
    %c0_i32 = arith.constant 0 : i32
    %c0_i32_0 = arith.constant 0 : i32
    %c0_i32_1 = arith.constant 0 : i32
    return %c0_i32, %c0_i32_0 : i32, i32
  }
  func.func @transform_7(%arg0: i32) -> (i32, i32) {
    %c0_i32 = arith.constant 0 : i32
    %c0_i32_0 = arith.constant 0 : i32
    return %arg0, %c0_i32 : i32, i32
  }
}

module attributes {stable_mosaic.version = 11 : i64} {
  func.func @mlp_kernel(%arg0: i32, %arg1: memref<8x16xbf16, #tpu.memory_space<vmem>>, %arg2: memref<16x32xbf16, #tpu.memory_space<vmem>>, %arg3: memref<1x32xf32, #tpu.memory_space<vmem>>, %arg4: memref<32x32xbf16, #tpu.memory_space<vmem>>, %arg5: memref<1x32xf32, #tpu.memory_space<vmem>>, %arg6: memref<32x8xbf16, #tpu.memory_space<vmem>>, %arg7: memref<1x8xf32, #tpu.memory_space<vmem>>, %arg8: memref<8x8xf32, #tpu.memory_space<vmem>>) attributes {dimension_semantics = [#tpu.dimension_semantics<parallel>], iteration_bounds = array<i64: 1>, scalar_prefetch = 0 : i64, scratch_operands = 0 : i64, tpu.core_type = #tpu.core_type<tc>, window_params = [{transform_indices = @transform_0, window_bounds = array<i64: 8, 16>}, {pipeline_mode = #tpu.pipeline_mode<synchronous>, transform_indices = @transform_1, window_bounds = array<i64: 16, 32>}, {pipeline_mode = #tpu.pipeline_mode<synchronous>, transform_indices = @transform_2, window_bounds = array<i64: 1, 32>}, {pipeline_mode = #tpu.pipeline_mode<synchronous>, transform_indices = @transform_3, window_bounds = array<i64: 32, 32>}, {pipeline_mode = #tpu.pipeline_mode<synchronous>, transform_indices = @transform_4, window_bounds = array<i64: 1, 32>}, {pipeline_mode = #tpu.pipeline_mode<synchronous>, transform_indices = @transform_5, window_bounds = array<i64: 32, 8>}, {pipeline_mode = #tpu.pipeline_mode<synchronous>, transform_indices = @transform_6, window_bounds = array<i64: 1, 8>}, {transform_indices = @transform_7, window_bounds = array<i64: 8, 8>}]} {
    %c0 = arith.constant 0 : index
    %c0_0 = arith.constant 0 : index
    %0 = vector.load %arg1[%c0, %c0_0] : memref<8x16xbf16, #tpu.memory_space<vmem>>, vector<8x16xbf16>
    %c0_1 = arith.constant 0 : index
    %c0_2 = arith.constant 0 : index
    %1 = vector.load %arg2[%c0_1, %c0_2] : memref<16x32xbf16, #tpu.memory_space<vmem>>, vector<16x32xbf16>
    %cst = arith.constant dense<0.000000e+00> : vector<8x32xf32>
    %2 = tpu.matmul %0, %1, %cst {dimension_numbers = #tpu.dot_dimension_numbers<[1], [0], [0], [1], [0, 0, 1, 1], [], []>} : vector<8x16xbf16>, vector<16x32xbf16>, vector<8x32xf32> -> vector<8x32xf32>
    %c0_3 = arith.constant 0 : index
    %c0_4 = arith.constant 0 : index
    %3 = vector.load %arg3[%c0_3, %c0_4] : memref<1x32xf32, #tpu.memory_space<vmem>>, vector<1x32xf32>
    %4 = vector.broadcast %3 : vector<1x32xf32> to vector<8x32xf32>
    %5 = arith.addf %2, %4 : vector<8x32xf32>
    %cst_5 = arith.constant 0.000000e+00 : f32
    %6 = vector.broadcast %cst_5 : f32 to vector<8x32xf32>
    %7 = arith.maximumf %5, %6 : vector<8x32xf32>
    %8 = arith.truncf %7 : vector<8x32xf32> to vector<8x32xbf16>
    %c0_6 = arith.constant 0 : index
    %c0_7 = arith.constant 0 : index
    %9 = vector.load %arg4[%c0_6, %c0_7] : memref<32x32xbf16, #tpu.memory_space<vmem>>, vector<32x32xbf16>
    %cst_8 = arith.constant dense<0.000000e+00> : vector<8x32xf32>
    %10 = tpu.matmul %8, %9, %cst_8 {dimension_numbers = #tpu.dot_dimension_numbers<[1], [0], [0], [1], [0, 0, 1, 1], [], []>} : vector<8x32xbf16>, vector<32x32xbf16>, vector<8x32xf32> -> vector<8x32xf32>
    %c0_9 = arith.constant 0 : index
    %c0_10 = arith.constant 0 : index
    %11 = vector.load %arg5[%c0_9, %c0_10] : memref<1x32xf32, #tpu.memory_space<vmem>>, vector<1x32xf32>
    %12 = vector.broadcast %11 : vector<1x32xf32> to vector<8x32xf32>
    %13 = arith.addf %10, %12 : vector<8x32xf32>
    %cst_11 = arith.constant 0.000000e+00 : f32
    %14 = vector.broadcast %cst_11 : f32 to vector<8x32xf32>
    %15 = arith.maximumf %13, %14 : vector<8x32xf32>
    %16 = arith.truncf %15 : vector<8x32xf32> to vector<8x32xbf16>
    %c0_12 = arith.constant 0 : index
    %c0_13 = arith.constant 0 : index
    %17 = vector.load %arg6[%c0_12, %c0_13] : memref<32x8xbf16, #tpu.memory_space<vmem>>, vector<32x8xbf16>
    %cst_14 = arith.constant dense<0.000000e+00> : vector<8x8xf32>
    %18 = tpu.matmul %16, %17, %cst_14 {dimension_numbers = #tpu.dot_dimension_numbers<[1], [0], [0], [1], [0, 0, 1, 1], [], []>} : vector<8x32xbf16>, vector<32x8xbf16>, vector<8x8xf32> -> vector<8x8xf32>
    %c0_15 = arith.constant 0 : index
    %c0_16 = arith.constant 0 : index
    %19 = vector.load %arg7[%c0_15, %c0_16] : memref<1x8xf32, #tpu.memory_space<vmem>>, vector<1x8xf32>
    %20 = vector.broadcast %19 : vector<1x8xf32> to vector<8x8xf32>
    %21 = arith.addf %18, %20 : vector<8x8xf32>
    %c0_17 = arith.constant 0 : index
    %c0_18 = arith.constant 0 : index
    %22 = vector.load %arg8[%c0_17, %c0_18] : memref<8x8xf32, #tpu.memory_space<vmem>>, vector<8x8xf32>
    tpu.vector_store %arg8[%c0_17, %c0_18], %21 {strides = array<i32>} : memref<8x8xf32, #tpu.memory_space<vmem>>, vector<8x8xf32>,
    return
  }
  func.func @transform_0(%arg0: i32) -> (i32, i32) {
    %c0_i32 = arith.constant 0 : i32
    %c0_i32_0 = arith.constant 0 : i32
    return %arg0, %c0_i32 : i32, i32
  }
  func.func @transform_1(%arg0: i32) -> (i32, i32) {
    %c0_i32 = arith.constant 0 : i32
    %c0_i32_0 = arith.constant 0 : i32
    %c0_i32_1 = arith.constant 0 : i32
    return %c0_i32, %c0_i32_0 : i32, i32
  }
  func.func @transform_2(%arg0: i32) -> (i32, i32) {
    %c0_i32 = arith.constant 0 : i32
    %c0_i32_0 = arith.constant 0 : i32
    %c0_i32_1 = arith.constant 0 : i32
    return %c0_i32, %c0_i32_0 : i32, i32
  }
  func.func @transform_3(%arg0: i32) -> (i32, i32) {
    %c0_i32 = arith.constant 0 : i32
    %c0_i32_0 = arith.constant 0 : i32
    %c0_i32_1 = arith.constant 0 : i32
    return %c0_i32, %c0_i32_0 : i32, i32
  }
  func.func @transform_4(%arg0: i32) -> (i32, i32) {
    %c0_i32 = arith.constant 0 : i32
    %c0_i32_0 = arith.constant 0 : i32
    %c0_i32_1 = arith.constant 0 : i32
    return %c0_i32, %c0_i32_0 : i32, i32
  }
  func.func @transform_5(%arg0: i32) -> (i32, i32) {
    %c0_i32 = arith.constant 0 : i32
    %c0_i32_0 = arith.constant 0 : i32
    %c0_i32_1 = arith.constant 0 : i32
    return %c0_i32, %c0_i32_0 : i32, i32
  }
  func.func @transform_6(%arg0: i32) -> (i32, i32) {
    %c0_i32 = arith.constant 0 : i32
    %c0_i32_0 = arith.constant 0 : i32
    %c0_i32_1 = arith.constant 0 : i32
    return %c0_i32, %c0_i32_0 : i32, i32
  }
  func.func @transform_7(%arg0: i32) -> (i32, i32) {
    %c0_i32 = arith.constant 0 : i32
    %c0_i32_0 = arith.constant 0 : i32
    return %arg0, %c0_i32 : i32, i32
  }
}

</mosaic_0001>

<bundles_post_ra>
// kernel: tpu_custom_call.1
= control target key start
LH: loop header
LB: loop body
LE: loop exit
PB: predicated region body
PF: predicated region fallthrough
CT: control target
= control target key end

     0   :  { %v314_v1 = vmov 0.0   ;;  %vm44_vm0 = vcmask 130048   ;;  %vm315_vm1 = vmmov 0   ;;  %s396_s0 = inlined_call_operand.vmem [shape: bf16[8,16], index: 0, kind: input, shape index: {}]   ;;  %s397_s1 = inlined_call_operand.vmem [shape: bf16[16,32], index: 1, kind: input, shape index: {}]   ;;  %s398_s2 = inlined_call_operand.vmem [shape: f32[1,32], index: 2, kind: input, shape index: {}]   ;;  %s399_s3 = inlined_call_operand.vmem [shape: bf16[32,32], index: 3, kind: input, shape index: {}]   ;;  %s400_s4 = inlined_call_operand.vmem [shape: f32[1,32], index: 4, kind: input, shape index: {}]   ;;  %s401_s5 = inlined_call_operand.vmem [shape: bf16[32,8], index: 5, kind: input, shape index: {}]   ;;  %s402_s6 = inlined_call_operand.vmem [shape: f32[1,8], index: 6, kind: input, shape index: {}]   ;;  %s403_s7 = inlined_call_operand.hbm [shape: f32[8,8], index: 7, kind: output, shape index: {}]  }
   0x1   :  { %v285_v0 = vld [vmem:[%s397_s1] sm:$0xff]   ;;  %260 = vmatprep.subr.bf16.mxu0 %v314_v1  ;;  %266 = vmatprep.subr.bf16.mxu1 %v314_v1 }
   0x2   :  { %v28_v2 = vld [vmem:[%s396_s0] sm:$0xf]  ;;  %261 = vmatpush3.bf16.msra.mxu0 %v285_v0  ;;  %262 = vmatprep.mubr.msk.bf16.mxu0 %vm315_vm1, %v314_v1 }
   0x3   :  { %270 = vmatprep.mubr.msk.bf16.mxu1 %vm315_vm1, %v314_v1  ;;  %274 = vmatprep.subr.bf16.mxu0 %v314_v1 }
   0x4   :  { %12 = vsyncpa [#allocation3], 0  ;;  %v286_v3 = vld [vmem:[%s399_s3] sm:$0xff]   ;;  %v287_v4 = vld [vmem:[%s399_s3 + $0x8] sm:$0xff]   ;;  %vm113_vm2 = vcmask 261120   ;;  %s316_s15 = smov [#allocation2]  }
   0x5   :  { %263 = vmatmul.mubr.msk.bf16.vlgmr.msra.gmra.mrb[0].mxu0 %vm44_vm0, %v28_v2  ;;  %267 = vmatpush3.bf16.msra.mxu1 %v286_v3  ;;  %v288_v5 = vld [vmem:[%s401_s5] sm:$0xff]   ;;  %v289_v14 = vld [vmem:[%s401_s5 + $0x8] sm:$0xff]   ;;  %s233_s16 = sshll.u32 %s316_s15, 4  ;;  %vm225_vm3 = vcmask 64512   ;;  %s234_s16 = int_to_ptr.vmem [resolvable:$true] %s233_s16 }
   0x6   :  { %278 = vmatprep.mubr.msk.bf16.mxu0 %vm315_vm1, %v314_v1  ;;  %268 = vmatprep.subr.bf16.mxu1 %v314_v1  ;;  %v241_v6 = vld [vmem:[%s398_s2] ss:$0 sm:$0xff]  ;;  %p295_p1 = scmp.lt.s32.totalorder %s234_s16, %s234_s16 }
   0x7   :  { %275 = vmatpush3.bf16.msra.mxu0 %v288_v5  ;;  %v244_v15 = vld [vmem:[%s400_s4] ss:$0 sm:$0xff]  ;;  %s290_s4 = scalar_lea.vmem %s234_s16, 128 }
   0x8   :  { %276 = vmatprep.subr.bf16.mxu0 %v314_v1  ;;  %v248_v23 = vld [vmem:[%s402_s6] ss:$0 sm:$0xff]  ;;  %p291_p0 = scmp.ne.s32.totalorder %s234_s16, %s290_s4  ;;  %p296_p2 = scmp.lt.s32.totalorder %s290_s4, %s290_s4 }
   0x9   :  { %269 = vmatpush3.bf16.msra.mxu1 %v287_v4 }
   0xa   :  { %p297_p3 = por %p296_p2, %p295_p1 }
   0xb   :  { %277 = vmatpush3.bf16.msra.mxu0 %v289_v14 }
   0xc   :  { %p298_p4 = pnand %p297_p3, %p291_p0 }
  0xd8   :  { %v82_v7 = vpop.f32.mrb[0].mxu0 }
  0xd9   :  { %v83_v8 = vadd.f32 %v241_v6, %v82_v7  ;;  %v264_v9 = vpop.f32.mrb[1].mxu0 }
  0xda   :  { %v85_v10 = vpop.f32.mrb[2].mxu0 }
  0xdb   :  { %v88_v11 = vmax.f32 %v83_v8, 0.0  ;;  %v265_v12 = vpop.f32.mrb[3].mxu0 }
  0xdd   :  { %v89_v13 = vpack.c.bf16 %v88_v11, %v88_v11 }
  0xdf   :  { %271 = vmatmul.mubr.msk.bf16.vlgmr.msra.gmra.mrb[0].mxu1 %vm113_vm2, %v89_v13 }
 0x1b2   :  { %v151_v16 = vpop.f32.mrb[0].mxu1 }
 0x1b3   :  { %v152_v17 = vadd.f32 %v244_v15, %v151_v16  ;;  %v272_v18 = vpop.f32.mrb[1].mxu1 }
 0x1b4   :  { %v154_v19 = vpop.f32.mrb[2].mxu1 }
 0x1b5   :  { %v157_v20 = vmax.f32 %v152_v17, 0.0  ;;  %v273_v21 = vpop.f32.mrb[3].mxu1 }
 0x1b7   :  { %v158_v22 = vpack.c.bf16 %v157_v20, %v157_v20 }
 0x1b9   :  { %279 = vmatmul.mubr.msk.bf16.vlgmr.msra.gmra.mrb[4].mxu0 %vm113_vm2, %v158_v22 }
 0x28c   :  { %v219_v24 = vpop.f32.mrb[4].mxu0 }
 0x28d   :  { %v220_v25 = vadd.f32 %v248_v23, %v219_v24  ;;  %v280_v26 = vpop.f32.mrb[5].mxu0 }
 0x28e   :  { %v222_v27 = vpop.f32.mrb[6].mxu0 }
 0x28f   :  { %v281_v28 = vpop.f32.mrb[7].mxu0  ;;  %226 = vst.msk [vmem:[#allocation2] sm:$0xff] %vm225_vm3, %v220_v25 }
 0x290   :  { %301 = shalt.err (!%p298_p4)
}
 0x291   :  { %s302_s6 = scalar_lea.hbm %s403_s7, 128 }
 0x292   :  { %p303_p5 = scmp.ne.s32.totalorder %s403_s7, %s302_s6  ;;  %p306_p6 = scmp.lt.u32.totalorder %s302_s6, %s403_s7 }
 0x294   :  { %p308_p7 = pnand %p306_p6, %p303_p5 }
 0x296   :  { %311 = shalt.err (!%p308_p7)
}
 0x297   :  { %236 = dma.vmem_to_hbm [thread:$0]  %s234_s16, 128, %s403_s7, [#allocation3]  }
 0x298   :  { %312 = dma.done.wait [#allocation3], 128  }
 0x299   :  { %313 = vsyncadd [#allocation3], 4294967168 }
 0x29a   :  { %240 = vsyncpa [#allocation3], 1 }

// kernel: tpu_custom_call.1
= control target key start
LH: loop header
LB: loop body
LE: loop exit
PB: predicated region body
PF: predicated region fallthrough
CT: control target
= control target key end

     0   :  { %v314_v1 = vmov 0.0   ;;  %vm44_vm0 = vcmask 130048   ;;  %vm315_vm1 = vmmov 0   ;;  %s396_s0 = inlined_call_operand.vmem [shape: bf16[8,16], index: 0, kind: input, shape index: {}]   ;;  %s397_s1 = inlined_call_operand.vmem [shape: bf16[16,32], index: 1, kind: input, shape index: {}]   ;;  %s398_s2 = inlined_call_operand.vmem [shape: f32[1,32], index: 2, kind: input, shape index: {}]   ;;  %s399_s3 = inlined_call_operand.vmem [shape: bf16[32,32], index: 3, kind: input, shape index: {}]   ;;  %s400_s4 = inlined_call_operand.vmem [shape: f32[1,32], index: 4, kind: input, shape index: {}]   ;;  %s401_s5 = inlined_call_operand.vmem [shape: bf16[32,8], index: 5, kind: input, shape index: {}]   ;;  %s402_s6 = inlined_call_operand.vmem [shape: f32[1,8], index: 6, kind: input, shape index: {}]   ;;  %s403_s7 = inlined_call_operand.hbm [shape: f32[8,8], index: 7, kind: output, shape index: {}]  }
   0x1   :  { %v285_v0 = vld [vmem:[%s397_s1] sm:$0xff]   ;;  %260 = vmatprep.subr.bf16.mxu0 %v314_v1  ;;  %266 = vmatprep.subr.bf16.mxu1 %v314_v1 }
   0x2   :  { %v28_v2 = vld [vmem:[%s396_s0] sm:$0xf]  ;;  %261 = vmatpush3.bf16.msra.mxu0 %v285_v0  ;;  %262 = vmatprep.mubr.msk.bf16.mxu0 %vm315_vm1, %v314_v1 }
   0x3   :  { %270 = vmatprep.mubr.msk.bf16.mxu1 %vm315_vm1, %v314_v1  ;;  %274 = vmatprep.subr.bf16.mxu0 %v314_v1 }
   0x4   :  { %12 = vsyncpa [#allocation3], 0  ;;  %v286_v3 = vld [vmem:[%s399_s3] sm:$0xff]   ;;  %v287_v4 = vld [vmem:[%s399_s3 + $0x8] sm:$0xff]   ;;  %vm113_vm2 = vcmask 261120   ;;  %s316_s15 = smov [#allocation2]  }
   0x5   :  { %263 = vmatmul.mubr.msk.bf16.vlgmr.msra.gmra.mrb[0].mxu0 %vm44_vm0, %v28_v2  ;;  %267 = vmatpush3.bf16.msra.mxu1 %v286_v3  ;;  %v288_v5 = vld [vmem:[%s401_s5] sm:$0xff]   ;;  %v289_v14 = vld [vmem:[%s401_s5 + $0x8] sm:$0xff]   ;;  %s233_s16 = sshll.u32 %s316_s15, 4  ;;  %vm225_vm3 = vcmask 64512   ;;  %s234_s16 = int_to_ptr.vmem [resolvable:$true] %s233_s16 }
   0x6   :  { %278 = vmatprep.mubr.msk.bf16.mxu0 %vm315_vm1, %v314_v1  ;;  %268 = vmatprep.subr.bf16.mxu1 %v314_v1  ;;  %v241_v6 = vld [vmem:[%s398_s2] ss:$0 sm:$0xff]  ;;  %p295_p1 = scmp.lt.s32.totalorder %s234_s16, %s234_s16 }
   0x7   :  { %275 = vmatpush3.bf16.msra.mxu0 %v288_v5  ;;  %v244_v15 = vld [vmem:[%s400_s4] ss:$0 sm:$0xff]  ;;  %s290_s4 = scalar_lea.vmem %s234_s16, 128 }
   0x8   :  { %276 = vmatprep.subr.bf16.mxu0 %v314_v1  ;;  %v248_v23 = vld [vmem:[%s402_s6] ss:$0 sm:$0xff]  ;;  %p291_p0 = scmp.ne.s32.totalorder %s234_s16, %s290_s4  ;;  %p296_p2 = scmp.lt.s32.totalorder %s290_s4, %s290_s4 }
   0x9   :  { %269 = vmatpush3.bf16.msra.mxu1 %v287_v4 }
   0xa   :  { %p297_p3 = por %p296_p2, %p295_p1 }
   0xb   :  { %277 = vmatpush3.bf16.msra.mxu0 %v289_v14 }
   0xc   :  { %p298_p4 = pnand %p297_p3, %p291_p0 }
  0xd8   :  { %v82_v7 = vpop.f32.mrb[0].mxu0 }
  0xd9   :  { %v83_v8 = vadd.f32 %v241_v6, %v82_v7  ;;  %v264_v9 = vpop.f32.mrb[1].mxu0 }
  0xda   :  { %v85_v10 = vpop.f32.mrb[2].mxu0 }
  0xdb   :  { %v88_v11 = vmax.f32 %v83_v8, 0.0  ;;  %v265_v12 = vpop.f32.mrb[3].mxu0 }
  0xdd   :  { %v89_v13 = vpack.c.bf16 %v88_v11, %v88_v11 }
  0xdf   :  { %271 = vmatmul.mubr.msk.bf16.vlgmr.msra.gmra.mrb[0].mxu1 %vm113_vm2, %v89_v13 }
 0x1b2   :  { %v151_v16 = vpop.f32.mrb[0].mxu1 }
 0x1b3   :  { %v152_v17 = vadd.f32 %v244_v15, %v151_v16  ;;  %v272_v18 = vpop.f32.mrb[1].mxu1 }
 0x1b4   :  { %v154_v19 = vpop.f32.mrb[2].mxu1 }
 0x1b5   :  { %v157_v20 = vmax.f32 %v152_v17, 0.0  ;;  %v273_v21 = vpop.f32.mrb[3].mxu1 }
 0x1b7   :  { %v158_v22 = vpack.c.bf16 %v157_v20, %v157_v20 }
 0x1b9   :  { %279 = vmatmul.mubr.msk.bf16.vlgmr.msra.gmra.mrb[4].mxu0 %vm113_vm2, %v158_v22 }
 0x28c   :  { %v219_v24 = vpop.f32.mrb[4].mxu0 }
 0x28d   :  { %v220_v25 = vadd.f32 %v248_v23, %v219_v24  ;;  %v280_v26 = vpop.f32.mrb[5].mxu0 }
 0x28e   :  { %v222_v27 = vpop.f32.mrb[6].mxu0 }
 0x28f   :  { %v281_v28 = vpop.f32.mrb[7].mxu0  ;;  %226 = vst.msk [vmem:[#allocation2] sm:$0xff] %vm225_vm3, %v220_v25 }
 0x290   :  { %301 = shalt.err (!%p298_p4)
}
 0x291   :  { %s302_s6 = scalar_lea.hbm %s403_s7, 128 }
 0x292   :  { %p303_p5 = scmp.ne.s32.totalorder %s403_s7, %s302_s6  ;;  %p306_p6 = scmp.lt.u32.totalorder %s302_s6, %s403_s7 }
 0x294   :  { %p308_p7 = pnand %p306_p6, %p303_p5 }
 0x296   :  { %311 = shalt.err (!%p308_p7)
}
 0x297   :  { %236 = dma.vmem_to_hbm [thread:$0]  %s234_s16, 128, %s403_s7, [#allocation3]  }
 0x298   :  { %312 = dma.done.wait [#allocation3], 128  }
 0x299   :  { %313 = vsyncadd [#allocation3], 4294967168 }
 0x29a   :  { %240 = vsyncpa [#allocation3], 1 }

</bundles_post_ra>
